<compile_context>
chip_gen: v7x
topology: tpu7x:2x2x1
jax: 0.10.0
libtpu: 0.0.40
codegen_flags: <defaults>
</compile_context>

<pallas_src>
import functools

import jax
import jax.numpy as jnp
from jax.experimental import pallas as pl
from jax.experimental.pallas import tpu as pltpu


def _round_up(x, m):
    return ((x + m - 1) // m) * m


def _stacked_gru_kernel(x_ref, h_ref, w_ref, b_ref, out_ref, act_ref,
                        *, hp, ap, mxu_dtype):
    """One grid step = one GRU layer.

    x_ref:   [B_pad, A_pad]            padded input x (consumed by layer 0)
    h_ref:   [1, B_pad, H_pad]         this layer's previous hidden
    w_ref:   [1, A_pad+H_pad, 4*H_pad] packed weights [ r | z | i_n | h_n ]
    b_ref:   [1, 1, 4*H_pad]           packed biases
    out_ref: [1, B_pad, H_pad]         this layer's new hidden
    act_ref: [B_pad, A_pad+H_pad]      VMEM scratch = fused matmul LHS
                                       ( activation carry | prev hidden )
    """
    l = pl.program_id(0)

    # Layer 0: seed the activation half of the fused LHS with the kernel
    # input.  Later layers reuse the carry written at the end of the
    # previous step (rows past H_pad multiply zero weight rows -> harmless).
    @pl.when(l == 0)
    def _():
        act_ref[:, 0:ap] = x_ref[...]

    h_prev = h_ref[0]                       # [B_pad, H_pad], f32
    # Hidden half of the fused LHS (refreshed every layer from h_ref).
    act_ref[:, ap:ap + hp] = h_prev

    lhs = act_ref[...].astype(mxu_dtype)    # [B_pad, A_pad + H_pad]
    w = w_ref[0].astype(mxu_dtype)          # [A_pad + H_pad, 4*H_pad]

    # Single MXU matmul per layer, f32 accumulate, + broadcast bias.
    g = jnp.dot(lhs, w, preferred_element_type=jnp.float32) + b_ref[0]

    # Lane-aligned gate blocks (hp is a multiple of 128).
    r = jax.nn.sigmoid(g[:, 0 * hp:1 * hp])
    z = jax.nn.sigmoid(g[:, 1 * hp:2 * hp])
    n = jnp.tanh(g[:, 2 * hp:3 * hp] + r * g[:, 3 * hp:4 * hp])
    # (1-z)*n + z*h  ==  n + z*(h - n)   (one fewer VPU op)
    h_new = n + z * (h_prev - n)

    out_ref[0] = h_new.astype(out_ref.dtype)

    # Carry this layer's hidden as the next layer's input (stays in VMEM).
    # Skip on the last layer — nothing consumes it.
    @pl.when(l + 1 < pl.num_programs(0))
    def _():
        act_ref[:, 0:hp] = h_new


def stacked_gru_forward(x_p, h_p, w_all, b_all, *, hp, ap, mxu_dtype):
    """x_p: [B_pad, A_pad]; h_p: [L, B_pad, H_pad];
    w_all: [L, A_pad+H_pad, 4*H_pad]; b_all: [L, 1, 4*H_pad]."""
    L, B_pad, H_pad = h_p.shape
    K_pad = w_all.shape[1]
    kernel = functools.partial(_stacked_gru_kernel, hp=hp, ap=ap,
                               mxu_dtype=mxu_dtype)
    return pl.pallas_call(
        kernel,
        out_shape=jax.ShapeDtypeStruct((L, B_pad, H_pad), jnp.float32),
        grid_spec=pltpu.PrefetchScalarGridSpec(
            num_scalar_prefetch=0,
            grid=(L,),
            in_specs=[
                # x: same block every step -> DMA'd once, kept VMEM-resident.
                pl.BlockSpec((B_pad, ap), lambda l: (0, 0)),
                pl.BlockSpec((1, B_pad, H_pad), lambda l: (l, 0, 0)),
                pl.BlockSpec((1, K_pad, 4 * H_pad), lambda l: (l, 0, 0)),
                pl.BlockSpec((1, 1, 4 * H_pad), lambda l: (l, 0, 0)),
            ],
            out_specs=pl.BlockSpec((1, B_pad, H_pad), lambda l: (l, 0, 0)),
            scratch_shapes=[pltpu.VMEM((B_pad, K_pad), jnp.float32)],
        ),
        compiler_params=pltpu.CompilerParams(
            dimension_semantics=("arbitrary",)),
    )(x_p, h_p, w_all, b_all)


def _pack_layer(w_ih, w_hh, b_ih, b_hh, in_size, H, A_pad, H_pad):
    """Pack torch-layout GRUCell params into one lane-aligned weight slab.

    Column blocks (each H_pad wide): [ r | z | i_n | h_n ].
    Row blocks: [0:A_pad] -> input activation, [A_pad:A_pad+H_pad] -> hidden.
    Padded rows/cols are zero.
    """
    K_pad = A_pad + H_pad
    wih_t = w_ih.T  # [in_size, 3H], gate order (r, z, n)
    whh_t = w_hh.T  # [H, 3H]

    w = jnp.zeros((K_pad, 4 * H_pad), jnp.float32)
    # r gate
    w = w.at[0:in_size, 0:H].set(wih_t[:, 0:H])
    w = w.at[A_pad:A_pad + H, 0:H].set(whh_t[:, 0:H])
    # z gate
    w = w.at[0:in_size, H_pad:H_pad + H].set(wih_t[:, H:2 * H])
    w = w.at[A_pad:A_pad + H, H_pad:H_pad + H].set(whh_t[:, H:2 * H])
    # n gate: input part (i_n) and hidden part (h_n) kept separate
    w = w.at[0:in_size, 2 * H_pad:2 * H_pad + H].set(wih_t[:, 2 * H:3 * H])
    w = w.at[A_pad:A_pad + H, 3 * H_pad:3 * H_pad + H].set(whh_t[:, 2 * H:3 * H])

    b = jnp.zeros((1, 4 * H_pad), jnp.float32)
    b = b.at[0, 0:H].set(b_ih[0:H] + b_hh[0:H])                      # r (folded)
    b = b.at[0, H_pad:H_pad + H].set(b_ih[H:2 * H] + b_hh[H:2 * H])  # z (folded)
    b = b.at[0, 2 * H_pad:2 * H_pad + H].set(b_ih[2 * H:3 * H])      # i_n
    b = b.at[0, 3 * H_pad:3 * H_pad + H].set(b_hh[2 * H:3 * H])      # h_n
    return w, b


class StackedGRUCellPallas:
    """Mirror of the PyTorch StackedGRUCell (forward only, dropout p=0)."""

    def __init__(self, num_layers, input_size, rnn_size, dropout=0.0,
                 key=None, mxu_dtype=jnp.float32):
        assert dropout == 0.0, "deterministic forward only"
        self.num_layers = num_layers
        self.input_size = input_size
        self.rnn_size = rnn_size
        # mxu_dtype=jnp.bfloat16 recommended on v6e/v7x (f32 accumulate kept);
        # default f32 to match the f32 reference exactly.
        self.mxu_dtype = mxu_dtype

        self.H_pad = _round_up(rnn_size, 128)
        self.A_pad = max(_round_up(input_size, 128), self.H_pad)
        self.K_pad = self.A_pad + self.H_pad

        if key is None:
            key = jax.random.PRNGKey(0)
        k = 1.0 / jnp.sqrt(jnp.float32(rnn_size))

        w_list, b_list = [], []
        self.raw_params = []
        in_size = input_size
        for _ in range(num_layers):
            key, k1, k2, k3, k4 = jax.random.split(key, 5)
            w_ih = jax.random.uniform(k1, (3 * rnn_size, in_size),
                                      jnp.float32, -k, k)
            w_hh = jax.random.uniform(k2, (3 * rnn_size, rnn_size),
                                      jnp.float32, -k, k)
            b_ih = jax.random.uniform(k3, (3 * rnn_size,), jnp.float32, -k, k)
            b_hh = jax.random.uniform(k4, (3 * rnn_size,), jnp.float32, -k, k)
            self.raw_params.append((w_ih, w_hh, b_ih, b_hh))
            w, b = _pack_layer(w_ih, w_hh, b_ih, b_hh, in_size, rnn_size,
                               self.A_pad, self.H_pad)
            w_list.append(w)
            b_list.append(b)
            in_size = rnn_size

        self.w_all = jnp.stack(w_list)                      # [L, K_pad, 4*H_pad]
        self.b_all = jnp.stack(b_list)                      # [L, 1,     4*H_pad]

    def __call__(self, x, h):
        """
        x: [batch, input_size]
        h: [num_layers, batch, hidden_size]
        returns (last_h [batch, hidden], h_stack [num_layers, batch, hidden])
        """
        B, I = x.shape
        L, H = self.num_layers, self.rnn_size
        B_pad = _round_up(max(B, 8), 8)

        x_p = jnp.zeros((B_pad, self.A_pad), jnp.float32).at[:B, :I].set(x)
        h_p = jnp.zeros((L, B_pad, self.H_pad), jnp.float32).at[:, :B, :H].set(h)

        out = stacked_gru_forward(x_p, h_p, self.w_all, self.b_all,
                                  hp=self.H_pad, ap=self.A_pad,
                                  mxu_dtype=self.mxu_dtype)
        h_stack = out[:, :B, :H]
        return h_stack[-1], h_stack

    # TODO(synk): if the real workload iterates this cell over a time
    # sequence, move the time loop inside the kernel (lax.fori_loop with the
    # weight slabs VMEM-resident) instead of one pallas_call per timestep.


def _gru_cell_ref(x, h, w_ih, w_hh, b_ih, b_hh):
    """Pure-JAX torch.nn.GRUCell reference (gate order r, z, n)."""
    H = h.shape[1]
    gi = x @ w_ih.T + b_ih
    gh = h @ w_hh.T + b_hh
    r = jax.nn.sigmoid(gi[:, :H] + gh[:, :H])
    z = jax.nn.sigmoid(gi[:, H:2 * H] + gh[:, H:2 * H])
    n = jnp.tanh(gi[:, 2 * H:] + r * gh[:, 2 * H:])
    return (1.0 - z) * n + z * h


if __name__ == "__main__":
    num_layers = 2
    batch = 4
    input_size = 16
    rnn_size = 32

    key = jax.random.PRNGKey(0)
    kx, kh, kp = jax.random.split(key, 3)
    x = jax.random.normal(kx, (batch, input_size), jnp.float32)
    h = jax.random.normal(kh, (num_layers, batch, rnn_size), jnp.float32)

    model = StackedGRUCellPallas(num_layers, input_size, rnn_size,
                                 dropout=0.0, key=kp)

    last_h, h_stack = model(x, h)
    (last_h, h_stack) = jax.block_until_ready((last_h, h_stack))

    # Pure-JAX reference of the same forward (same raw params).
    x_ref = x
    h_ref_list = []
    for i, (w_ih, w_hh, b_ih, b_hh) in enumerate(model.raw_params):
        h_i = _gru_cell_ref(x_ref, h[i], w_ih, w_hh, b_ih, b_hh)
        x_ref = h_i  # dropout(p=0) == identity between layers
        h_ref_list.append(h_i)
    ref_stack = jnp.stack(h_ref_list)

    assert last_h.shape == (batch, rnn_size)
    assert h_stack.shape == (num_layers, batch, rnn_size)
    assert jnp.allclose(h_stack, ref_stack, atol=1e-4, rtol=1e-4)
    assert jnp.allclose(last_h, ref_stack[-1], atol=1e-4, rtol=1e-4)

    print("KERNEL_OK")
</pallas_src>

<mosaic_0001>
module attributes {stable_mosaic.version = 11 : i64} {
  func.func @_stacked_gru_kernel(%arg0: i32, %arg1: memref<8x128xf32, #tpu.memory_space<vmem>>, %arg2: memref<1x8x128xf32, #tpu.memory_space<vmem>>, %arg3: memref<1x256x512xf32, #tpu.memory_space<vmem>>, %arg4: memref<1x1x512xf32, #tpu.memory_space<vmem>>, %arg5: memref<1x8x128xf32, #tpu.memory_space<vmem>>, %arg6: memref<8x256xf32, #tpu.memory_space<vmem>>) attributes {dimension_semantics = [#tpu.dimension_semantics<arbitrary>], iteration_bounds = array<i64: 2>, scalar_prefetch = 0 : i64, scratch_operands = 1 : i64, tpu.core_type = #tpu.core_type<tc>, window_params = [{pipeline_mode = #tpu.pipeline_mode<synchronous>, transform_indices = @transform_0, window_bounds = array<i64: 8, 128>}, {transform_indices = @transform_1, window_bounds = array<i64: 1, 8, 128>}, {transform_indices = @transform_2, window_bounds = array<i64: 1, 256, 512>}, {transform_indices = @transform_3, window_bounds = array<i64: 1, 1, 512>}, {transform_indices = @transform_4, window_bounds = array<i64: 1, 8, 128>}]} {
    %c0_i32 = arith.constant 0 : i32
    %0 = arith.cmpi eq, %arg0, %c0_i32 : i32
    %1 = arith.extui %0 : i1 to i32
    %c0_i32_0 = arith.constant 0 : i32
    %2 = arith.cmpi ne, %1, %c0_i32_0 : i32
    scf.if %2 {
      %c0_18 = arith.constant 0 : index
      %c0_19 = arith.constant 0 : index
      %41 = vector.load %arg1[%c0_18, %c0_19] : memref<8x128xf32, #tpu.memory_space<vmem>>, vector<8x128xf32>
      %c0_20 = arith.constant 0 : index
      %c0_21 = arith.constant 0 : index
      %42 = vector.load %arg6[%c0_20, %c0_21] : memref<8x256xf32, #tpu.memory_space<vmem>>, vector<8x128xf32>
      tpu.vector_store %arg6[%c0_20, %c0_21], %41 {strides = array<i32>} : memref<8x256xf32, #tpu.memory_space<vmem>>, vector<8x128xf32>,
    } else {
    }
    %c0 = arith.constant 0 : index
    %c0_1 = arith.constant 0 : index
    %c0_2 = arith.constant 0 : index
    %3 = vector.load %arg2[%c0, %c0_1, %c0_2] : memref<1x8x128xf32, #tpu.memory_space<vmem>>, vector<1x8x128xf32>
    %4 = vector.shape_cast %3 : vector<1x8x128xf32> to vector<8x128xf32>
    %c0_3 = arith.constant 0 : index
    %c128 = arith.constant 128 : index
    %5 = vector.load %arg6[%c0_3, %c128] : memref<8x256xf32, #tpu.memory_space<vmem>>, vector<8x128xf32>
    tpu.vector_store %arg6[%c0_3, %c128], %4 {strides = array<i32>} : memref<8x256xf32, #tpu.memory_space<vmem>>, vector<8x128xf32>,
    %c0_4 = arith.constant 0 : index
    %c0_5 = arith.constant 0 : index
    %6 = vector.load %arg6[%c0_4, %c0_5] : memref<8x256xf32, #tpu.memory_space<vmem>>, vector<8x256xf32>
    %c0_6 = arith.constant 0 : index
    %c0_7 = arith.constant 0 : index
    %c0_8 = arith.constant 0 : index
    %7 = vector.load %arg3[%c0_6, %c0_7, %c0_8] : memref<1x256x512xf32, #tpu.memory_space<vmem>>, vector<1x256x512xf32>
    %8 = vector.shape_cast %7 : vector<1x256x512xf32> to vector<256x512xf32>
    %cst = arith.constant dense<0.000000e+00> : vector<8x512xf32>
    %9 = tpu.matmul %6, %8, %cst {dimension_numbers = #tpu.dot_dimension_numbers<[1], [0], [0], [1], [0, 0, 1, 1], [], []>} : vector<8x256xf32>, vector<256x512xf32>, vector<8x512xf32> -> vector<8x512xf32>
    %c0_9 = arith.constant 0 : index
    %c0_10 = arith.constant 0 : index
    %c0_11 = arith.constant 0 : index
    %10 = vector.load %arg4[%c0_9, %c0_10, %c0_11] : memref<1x1x512xf32, #tpu.memory_space<vmem>>, vector<1x1x512xf32>
    %11 = vector.shape_cast %10 : vector<1x1x512xf32> to vector<1x512xf32>
    %12 = vector.broadcast %11 : vector<1x512xf32> to vector<8x512xf32>
    %13 = arith.addf %9, %12 : vector<8x512xf32>
    %14 = vector.extract_strided_slice %13 {offsets = [0, 0], sizes = [8, 128], strides = [1, 1]} : vector<8x512xf32> to vector<8x128xf32>
    %15 = arith.negf %14 : vector<8x128xf32>
    %16 = math.exp %15 : vector<8x128xf32>
    %cst_12 = arith.constant 1.000000e+00 : f32
    %17 = vector.broadcast %cst_12 : f32 to vector<8x128xf32>
    %18 = arith.addf %17, %16 : vector<8x128xf32>
    %19 = arith.divf %17, %18 : vector<8x128xf32>
    %20 = vector.extract_strided_slice %13 {offsets = [0, 128], sizes = [8, 128], strides = [1, 1]} : vector<8x512xf32> to vector<8x128xf32>
    %21 = arith.negf %20 : vector<8x128xf32>
    %22 = math.exp %21 : vector<8x128xf32>
    %cst_13 = arith.constant 1.000000e+00 : f32
    %23 = vector.broadcast %cst_13 : f32 to vector<8x128xf32>
    %24 = arith.addf %23, %22 : vector<8x128xf32>
    %25 = arith.divf %23, %24 : vector<8x128xf32>
    %26 = vector.extract_strided_slice %13 {offsets = [0, 256], sizes = [8, 128], strides = [1, 1]} : vector<8x512xf32> to vector<8x128xf32>
    %27 = vector.extract_strided_slice %13 {offsets = [0, 384], sizes = [8, 128], strides = [1, 1]} : vector<8x512xf32> to vector<8x128xf32>
    %28 = arith.mulf %19, %27 : vector<8x128xf32>
    %29 = arith.addf %26, %28 : vector<8x128xf32>
    %30 = math.tanh %29 : vector<8x128xf32>
    %31 = arith.subf %4, %30 : vector<8x128xf32>
    %32 = arith.mulf %25, %31 : vector<8x128xf32>
    %33 = arith.addf %30, %32 : vector<8x128xf32>
    %c0_14 = arith.constant 0 : index
    %c0_15 = arith.constant 0 : index
    %c0_16 = arith.constant 0 : index
    %34 = vector.load %arg5[%c0_14, %c0_15, %c0_16] : memref<1x8x128xf32, #tpu.memory_space<vmem>>, vector<1x8x128xf32>
    %35 = vector.shape_cast %34 : vector<1x8x128xf32> to vector<8x128xf32>
    %36 = vector.shape_cast %33 : vector<8x128xf32> to vector<1x8x128xf32>
    tpu.vector_store %arg5[%c0_14, %c0_15, %c0_16], %36 {strides = array<i32>} : memref<1x8x128xf32, #tpu.memory_space<vmem>>, vector<1x8x128xf32>,
    %c1_i32 = arith.constant 1 : i32
    %37 = arith.addi %arg0, %c1_i32 : i32
    %c2_i32 = arith.constant 2 : i32
    %38 = arith.cmpi slt, %37, %c2_i32 : i32
    %39 = arith.extui %38 : i1 to i32
    %c0_i32_17 = arith.constant 0 : i32
    %40 = arith.cmpi ne, %39, %c0_i32_17 : i32
    scf.if %40 {
      %c0_18 = arith.constant 0 : index
      %c0_19 = arith.constant 0 : index
      %41 = vector.load %arg6[%c0_18, %c0_19] : memref<8x256xf32, #tpu.memory_space<vmem>>, vector<8x128xf32>
      tpu.vector_store %arg6[%c0_18, %c0_19], %33 {strides = array<i32>} : memref<8x256xf32, #tpu.memory_space<vmem>>, vector<8x128xf32>,
    } else {
    }
    return
  }
  func.func @transform_0(%arg0: i32) -> (i32, i32) {
    %c0_i32 = arith.constant 0 : i32
    %c0_i32_0 = arith.constant 0 : i32
    %c0_i32_1 = arith.constant 0 : i32
    return %c0_i32, %c0_i32_0 : i32, i32
  }
  func.func @transform_1(%arg0: i32) -> (i32, i32, i32) {
    %c0_i32 = arith.constant 0 : i32
    %c0_i32_0 = arith.constant 0 : i32
    %c0_i32_1 = arith.constant 0 : i32
    return %arg0, %c0_i32, %c0_i32_0 : i32, i32, i32
  }
  func.func @transform_2(%arg0: i32) -> (i32, i32, i32) {
    %c0_i32 = arith.constant 0 : i32
    %c0_i32_0 = arith.constant 0 : i32
    %c0_i32_1 = arith.constant 0 : i32
    return %arg0, %c0_i32, %c0_i32_0 : i32, i32, i32
  }
  func.func @transform_3(%arg0: i32) -> (i32, i32, i32) {
    %c0_i32 = arith.constant 0 : i32
    %c0_i32_0 = arith.constant 0 : i32
    %c0_i32_1 = arith.constant 0 : i32
    return %arg0, %c0_i32, %c0_i32_0 : i32, i32, i32
  }
  func.func @transform_4(%arg0: i32) -> (i32, i32, i32) {
    %c0_i32 = arith.constant 0 : i32
    %c0_i32_0 = arith.constant 0 : i32
    %c0_i32_1 = arith.constant 0 : i32
    return %arg0, %c0_i32, %c0_i32_0 : i32, i32, i32
  }
}

</mosaic_0001>

<bundles_post_ra>
// kernel: tpu_custom_call.1
= control target key start
LH: loop header
LB: loop body
LE: loop exit
PB: predicated region body
PF: predicated region fallthrough
CT: control target
= control target key end

     0   :  { %s1542_s0 = inlined_call_operand.hbm [shape: f32[8,128], index: 0, kind: input, shape index: {}]   ;;  %s1543_s1 = inlined_call_operand.hbm [shape: f32[2,8,128], index: 1, kind: input, shape index: {}]   ;;  %s1544_s2 = inlined_call_operand.hbm [shape: f32[2,256,512], index: 2, kind: input, shape index: {}]   ;;  %s1545_s3 = inlined_call_operand.vmem [shape: f32[2,1,512], index: 3, kind: input, shape index: {}]   ;;  %s1546_s4 = inlined_call_operand.hbm [shape: f32[2,8,128], index: 4, kind: output, shape index: {}]  }
   0x1   :  { %1551 = sst [smem:[#allocation13_spill]] %s1543_s1 }
   0x2   :  { %9 = vsyncpa [#allocation4], 0 }
   0x3   :  { %10 = vsyncpa [#allocation7], 0 }
   0x4   :  { %12 = vsyncpa [#allocation7 + $0x1], 0 }
   0x5   :  { %13 = vsyncpa [#allocation5], 0 }
   0x6   :  { %15 = vsyncpa [#allocation5 + $0x1], 0  ;;  %s1152_s15 = smov 0   ;;  %s1154_s16 = smov 0  }
   0x7   :  { %s1156_s17 = smov 0   ;;  %s1158_s18 = smov 0  }
   0x8 LB: > { %s1173_s19 = sadd.s32 1, %s1119_s18   ;;  %s49_s20 = sadd.s32 1, %s1115_s17  ;;  %s1119_s18 = sphi %s1158_s18, %s1570_s18   ;;  %s1115_s17 = sphi %s1156_s17, %s1569_s17   ;;  %s1111_s16 = sphi %s1154_s16, %s1568_s16   ;;  %s1107_s15 = sphi %s1152_s15, %s1567_s15  }
   0x9   : > { %s46_s21 = ssub.s32 %s1119_s18, %s1173_s19  ;;  %p56_p0 = scmp.ne.s32.totalorder %s1115_s17, %s1111_s16 }
   0xa   : > { %p47_p1 = scmp.eq.s32.totalorder %s46_s21, 0  ;;  %p57_p2 = scmp.eq.s32.totalorder %s1119_s18, 0 }
   0xb   : > { %p913_p4 = scmp.lt.s32.totalorder %s1119_s18, 2  ;;  %s175_s23 = sand.u32 1, %s1119_s18  }
   0xc   : > { %s1184_s22 = scalar_select %p47_p1, %s1115_s17, %s49_s20  }
   0xd   : > { %p58_p5 = por %p57_p2, %p56_p0  ;;  %s177_s24 = sand.u32 1, %s1115_s17  }
   0xe   : > { %s739_s25 = sshll.u32 %s177_s24, 3  ;;  %s740_s26 = sshll.u32 %s1119_s18, 7 }
   0xf   : > { %s1552_s1 = sld [smem:[#allocation13_spill]]  ;;  %s179_s30 = scalar_lea.vmem [#allocation6], %s739_s25 }
  0x10   : > { %s186_s5 = sshll.u32 %s179_s30, 4  ;;  %p1197_p6 = pnand %p913_p4, %p58_p5  ;;  %s1201_s5 = int_to_ptr.vmem [resolvable:$true] %s186_s5 }
  0x11   : > { %s1203_s7 = sshll.u32 %s177_s24, 10  ;;  %s1205_s8 = scalar_lea.sflag [#allocation7], %s175_s23 }
  0x12   : > { %p963_p8 = pneg %p1197_p6 }
  0x15   : > { %s1195_s29 = scalar_lea.hbm %s1552_s1, %s740_s26  ;;  %s966_s12 = scalar_lea.hbm %s1552_s1, 256 }
  0x16   : > { %s961_s9 = scalar_lea.hbm %s1195_s29, 128  ;;  %p967_p11 = scmp.lt.u32.totalorder %s1195_s29, %s1552_s1 }
  0x17   : > { %p962_p7 = scmp.ne.s32.totalorder %s1195_s29, %s961_s9  ;;  %p968_p12 = scmp.lt.u32.totalorder %s966_s12, %s961_s9 }
  0x18   : > { %p970_p1 = scmp.lt.u32.totalorder %s961_s9, %s1195_s29 }
  0x19   : > { %p964_p9 = pnand %p963_p8, %p962_p7  ;;  %p969_p13 = por %p968_p12, %p967_p11 }
  0x1b   : > { %p965_p10 = pneg %p964_p9  ;;  %p971_p2 = por %p970_p1, %p969_p13 }
  0x1d   : > { %p972_p4 = pnand %p971_p2, %p965_p10 }
  0x1f   : > { %975 = shalt.err (!%p972_p4)
}
  0x20   : > { %s976_s20 = scalar_lea.vmem %s1201_s5, 128  ;;  %s1121_s21 = smov [#allocation6]  }
  0x21   : > { %p977_p5 = scmp.ne.s32.totalorder %s1201_s5, %s976_s20  ;;  %s981_s23 = sshll.u32 %s1121_s21, 4  ;;  %s982_s23 = int_to_ptr.vmem [resolvable:$false] %s981_s23 }
  0x22   : > { %s983_s24 = scalar_lea.vmem %s982_s23, 256  ;;  %p984_p3 = scmp.lt.s32.totalorder %s1201_s5, %s982_s23 }
  0x23   : > { %p979_p7 = pnand %p977_p5, %p963_p8  ;;  %p985_p11 = scmp.lt.s32.totalorder %s983_s24, %s976_s20 }
  0x25   : > { %p980_p9 = pneg %p979_p7  ;;  %p986_p12 = por %p985_p11, %p984_p3 }
  0x27   : > { %p987_p13 = pnand %p986_p12, %p980_p9 }
  0x29   : > { %990 = shalt.err (!%p987_p13)
}
  0x2a   : > { %904 = dma.hbm_to_vmem [thread:$0]  (!%p1197_p6), %s1195_s29, 128, %s1201_s5, %s1205_s8  }
  0x2b   : > { %s197_s25 = scalar_lea.vmem [#allocation8], %s1203_s7  ;;  %s1235_s27 = sadd.s32 4294967295, %s1119_s18  }
  0x2c   : > { %s204_s26 = sshll.u32 %s197_s25, 4  ;;  %s735_s28 = sadd.s32 4294967294, %s1119_s18   ;;  %s1263_s26 = int_to_ptr.vmem [resolvable:$true] %s204_s26 }
  0x2d   : > { %p62_p3 = scmp.ne.s32.totalorder %s1111_s16, %s1107_s15  ;;  %p1547_p10 = scmp.eq.s32.totalorder %s1235_s27, 0 }
  0x2e   : > { %p138_p1 = scmp.eq.s32.totalorder %s1235_s27, 1  ;;  %p144_p2 = scmp.eq.s32.totalorder %s735_s28, 1 }
  0x2f   : > { %p1244_p4 = por %p1547_p10, %p62_p3  ;;  %p736_p5 = scmp.ge.s32.totalorder %s1119_s18, 1 }
  0x30   : > { %p1252_p7 = por %p138_p1, %p56_p0  ;;  %p1256_p9 = por %p144_p2, %p62_p3 }
  0x31   : > { %s1554_s30 = scalar_select %p1244_p4, 1, 0 }
  0x32   : > { %s1555_s29 = scalar_select %p1252_p7, 1, 0 }
  0x33   : > { %s1556_s5 = scalar_select %p1256_p9, 1, 0 }
  0x34   : > { %p151_p11 = scmp.lt.s32.totalorder %s1119_s18, 3  ;;  %s758_s7 = sshll.u32 %s1119_s18, 14 }
  0x35   : > { %s1122_s10 = smov [#allocation3]   ;;  %s1272_s14 = scalar_lea.hbm %s1544_s2, %s758_s7 }
  0x36   : > { %p1265_p13 = pnand %p736_p5, %p151_p11  ;;  %s164_s11 = sshll.u32 %s1122_s10, 4  ;;  %s1276_s11 = int_to_ptr.vmem [resolvable:$true] %s164_s11 }
  0x37   : > { %s991_s21 = scalar_lea.hbm %s1272_s14, 16384  ;;  %s996_s25 = scalar_lea.hbm %s1544_s2, 32768 }
  0x38   : > { %s1557_s9 = scalar_select %p1265_p13, 1, 0 }
  0x39   : > { %p897_p0 = pneg %p1265_p13  ;;  %p992_p1 = scmp.ne.s32.totalorder %s1272_s14, %s991_s21 }
  0x3a   : > { %p997_p11 = scmp.lt.u32.totalorder %s1272_s14, %s1544_s2  ;;  %p998_p12 = scmp.lt.u32.totalorder %s996_s25, %s991_s21 }
  0x3b   : > { %p1280_p3 = pnand %p897_p0, %p1547_p10  ;;  %p994_p2 = pnand %p992_p1, %p963_p8 }
  0x3c   : > { %p999_p9 = por %p998_p12, %p997_p11  ;;  %p1000_p0 = scmp.lt.u32.totalorder %s991_s21, %s1272_s14 }
  0x3d   : > { %p995_p5 = pneg %p994_p2 }
  0x3e   : > { %p1001_p10 = por %p1000_p0, %p999_p9 }
  0x40   : > { %p1002_p7 = pnand %p1001_p10, %p995_p5 }
  0x42   : > { %1005 = shalt.err (!%p1002_p7)
}
  0x43   : > { %s1006_s10 = scalar_lea.vmem %s1263_s26, 16384  ;;  %s1123_s12 = smov [#allocation8]  }
  0x44   : > { %p1007_p1 = scmp.ne.s32.totalorder %s1263_s26, %s1006_s10  ;;  %s1011_s13 = sshll.u32 %s1123_s12, 4  ;;  %s1012_s13 = int_to_ptr.vmem [resolvable:$false] %s1011_s13 }
  0x45   : > { %s1013_s23 = scalar_lea.vmem %s1012_s13, 32768  ;;  %p1014_p13 = scmp.lt.s32.totalorder %s1263_s26, %s1012_s13 }
  0x46   : > { %p1009_p2 = pnand %p1007_p1, %p963_p8  ;;  %p1015_p12 = scmp.lt.s32.totalorder %s1013_s23, %s1006_s10 }
  0x48   : > { %p1010_p4 = pneg %p1009_p2  ;;  %p1016_p11 = por %p1015_p12, %p1014_p13 }
  0x4a   : > { %p1017_p9 = pnand %p1016_p11, %p1010_p4 }
  0x4c   : > { %1020 = shalt.err (!%p1017_p9)
}
  0x4d   : > { %s1124_s21 = smov 512   ;;  %s1125_s24 = smov 32  }
  0x4e   : > { %907 = dma.hbm_to_vmem [thread:$0]  (!%p1197_p6), %s1272_s14, 16384, %s1263_s26, %s1205_s8, %s1124_s21, %s1124_s21, %s1125_s24  }
  0x4f   : > { %s1021_s7 = scalar_lea.hbm %s1542_s0, 128  ;;  %p1023_p10 = pneg %p1280_p3 }
  0x50   : > { %p1022_p8 = scmp.ne.s32.totalorder %s1542_s0, %s1021_s7  ;;  %p1028_p13 = scmp.lt.u32.totalorder %s1021_s7, %s1542_s0 }
  0x52   : > { %p1024_p4 = pnand %p1023_p10, %p1022_p8 }
  0x54   : > { %p1025_p7 = pneg %p1024_p4 }
  0x56   : > { %p1030_p5 = pnand %p1028_p13, %p1025_p7 }
  0x58   : > { %1033 = shalt.err (!%p1030_p5)
}
  0x59   : > { %s1034_s6 = scalar_lea.vmem %s1276_s11, 128  ;;  %p1042_p2 = scmp.lt.s32.totalorder %s1276_s11, %s1276_s11 }
  0x5a   : > { %p1035_p6 = scmp.ne.s32.totalorder %s1276_s11, %s1034_s6  ;;  %p1043_p12 = scmp.lt.s32.totalorder %s1034_s6, %s1034_s6 }
  0x5c   : > { %p1037_p0 = pnand %p1035_p6, %p1023_p10  ;;  %p1044_p11 = por %p1043_p12, %p1042_p2 }
  0x5e   : > { %p1038_p1 = pneg %p1037_p0 }
  0x60   : > { %p1045_p9 = pnand %p1044_p11, %p1038_p1 }
  0x62   : > { %1048 = shalt.err (!%p1045_p9)
}
  0x63   : > { %900 = dma.hbm_to_vmem [thread:$0]  (!%p1280_p3), %s1542_s0, 128, %s1276_s11, [#allocation4]  }
  0x64   : > { %p1559_p8 = scmp.ne.s32.totalorder %s1557_s9, 0 }
  0x65   : > { %p1560_p4 = scmp.eq.s32.totalorder (!%p1559_p8), %s1235_s27, 0 }
  0x66   : > { %223 = sbr.rel (%p1559_p8) target bundleno = 482 (0x1e2), region = 36 }
  0x6d   : > { %1094 = dma.done.wait (%p1560_p4), [#allocation4], 128   ;;  %p1561_p10 = pmov %p1560_p4 }
  0x6e   : > { %s229_s26 = sand.u32 1, %s1235_s27   ;;  %s1337_s14 = sand.u32 1, %s1111_s16  }
  0x6f   : > { %1096 = vsyncadd (%p1561_p10), [#allocation4], 4294967168  ;;  %s746_s20 = sshll.u32 %s1337_s14, 3  ;;  %s230_s23 = scalar_lea.sflag [#allocation7], %s229_s26 }
  0x70   : > { %s1340_s21 = scalar_lea.vmem [#allocation6], %s746_s20  ;;  %p1562_p3 = scmp.ne.s32.totalorder %s1554_s30, 0 }
  0x72   : > { %1098 = dma.done.wait (%p1562_p3), %s230_s23, 16512  }
  0x73   : > { %1100 = vsyncadd (%p1562_p3), %s230_s23, 4294950784  ;;  %s747_s9 = sshll.u32 %s1337_s14, 10  ;;  %p276_p7 = scmp.lt.s32.totalorder %s1235_s27, 1 }
  0x74   : > { %s1354_s12 = scalar_lea.vmem [#allocation8], %s747_s9  ;;  %s1356_s10 = scalar_lea.vmem [#allocation9], %s746_s20 }
  0x75   : > { %s277_s11 = scalar_select %p276_p7, %s1235_s27, 1 }
  0x76   : > { %p1563_p13 = scmp.ne.s32.totalorder %s1235_s27, 0 }
  0x77   : > { %s749_s24 = sshll.u32 %s277_s11, 2  ;;  %v284_v0 = vld [vmem:[#allocation3] sm:$0xff] (!%p1563_p13) }
  0x78   : > { %s1352_s7 = scalar_lea.vmem %s1545_s3, %s749_s24  ;;  %283 = sbr.rel (%p1563_p13) target bundleno = 127 (0x7f), region = 52  ;;  %285 = vst [vmem:[#allocation2] sm:$0xff] (!%p1563_p13), %v284_v0 }
  0x7f PF: > { %v291_v1 = vld [vmem:[%s1354_s12 + $0x8] sm:$0xff]  ;;  %v290_v3 = vld [vmem:[%s1354_s12] sm:$0xff]  ;;  %v293_v22 = vld [vmem:[%s1354_s12 + $0x18] sm:$0xff]  ;;  %s601_s30 = sadd.s32 1, %s1235_s27 }
  0x80   : > { %v295_v2 = vld [vmem:[%s1354_s12 + $0x28] sm:$0xff]  ;;  %v294_v5 = vld [vmem:[%s1354_s12 + $0x20] sm:$0xff]  ;;  %v297_v26 = vld [vmem:[%s1354_s12 + $0x38] sm:$0xff]  ;;  %p753_p5 = scmp.ge.s32.totalorder %s601_s30, 2 }
  0x81   : > { %v759_v4 = vpack.c.bf16 %v295_v2, %v291_v1  ;;  %v299_v6 = vld [vmem:[%s1354_s12 + $0x48] sm:$0xff]  ;;  %v761_v8 = vpack.c.bf16 %v294_v5, %v290_v3  ;;  %v298_v10 = vld [vmem:[%s1354_s12 + $0x40] sm:$0xff]  ;;  %v823_v28 = vpack.c.bf16 %v297_v26, %v293_v22  ;;  %v292_v29 = vld [vmem:[%s1354_s12 + $0x10] sm:$0xff] }
  0x82   : > { %v303_v7 = vld [vmem:[%s1354_s12 + $0x68] sm:$0xff]  ;;  %v302_v11 = vld [vmem:[%s1354_s12 + $0x60] sm:$0xff]  ;;  %v296_v30 = vld [vmem:[%s1354_s12 + $0x30] sm:$0xff] }
  0x83   : > { %v763_v9 = vpack.c.bf16 %v303_v7, %v299_v6  ;;  %v307_v12 = vld [vmem:[%s1354_s12 + $0x88] sm:$0xff]  ;;  %760 = vmatprep.subr.bf16.mxu0 %v759_v4  ;;  %v765_v14 = vpack.c.bf16 %v302_v11, %v298_v10  ;;  %v306_v16 = vld [vmem:[%s1354_s12 + $0x80] sm:$0xff]  ;;  %v825_v31 = vpack.c.bf16 %v296_v30, %v292_v29  ;;  %v301_v32 = vld [vmem:[%s1354_s12 + $0x58] sm:$0xff]  ;;  %824 = vmatprep.subr.bf16.mxu1 %v823_v28 }
  0x84   : > { %v311_v13 = vld [vmem:[%s1354_s12 + $0xa8] sm:$0xff]  ;;  %762 = vmatpush1.bf16.msra.mxu0 %v761_v8  ;;  %v310_v17 = vld [vmem:[%s1354_s12 + $0xa0] sm:$0xff]  ;;  %v305_v33 = vld [vmem:[%s1354_s12 + $0x78] sm:$0xff] }
  0x85   : > { %764 = vmatprep.subr.bf16.mxu0 %v763_v9  ;;  %v767_v15 = vpack.c.bf16 %v311_v13, %v307_v12  ;;  %v315_v18 = vld [vmem:[%s1354_s12 + $0xc8] sm:$0xff]  ;;  %v769_v20 = vpack.c.bf16 %v310_v17, %v306_v16  ;;  %v314_v21 = vld [vmem:[%s1354_s12 + $0xc0] sm:$0xff]  ;;  %v827_v36 = vpack.c.bf16 %v305_v33, %v301_v32  ;;  %v300_v37 = vld [vmem:[%s1354_s12 + $0x50] sm:$0xff]  ;;  %826 = vmatpush1.bf16.msra.mxu1 %v825_v31 }
  0x86   : > { %v319_v19 = vld [vmem:[%s1354_s12 + $0xe8] sm:$0xff]  ;;  %v318_v24 = vld [vmem:[%s1354_s12 + $0xe0] sm:$0xff]  ;;  %v304_v41 = vld [vmem:[%s1354_s12 + $0x70] sm:$0xff] }
  0x87   : > { %v771_v23 = vpack.c.bf16 %v319_v19, %v315_v18  ;;  %v323_v25 = vld [vmem:[%s1354_s12 + $0x108] sm:$0xff]  ;;  %v773_v34 = vpack.c.bf16 %v318_v24, %v314_v21  ;;  %v322_v35 = vld [vmem:[%s1354_s12 + $0x100] sm:$0xff]  ;;  %828 = vmatprep.subr.bf16.mxu1 %v827_v36  ;;  %v829_v43 = vpack.c.bf16 %v304_v41, %v300_v37  ;;  %v309_v44 = vld [vmem:[%s1354_s12 + $0x98] sm:$0xff] }
  0x88   : > { %766 = vmatpush1.bf16.msra.mxu0 %v765_v14  ;;  %v327_v27 = vld [vmem:[%s1354_s12 + $0x128] sm:$0xff]  ;;  %v326_v39 = vld [vmem:[%s1354_s12 + $0x120] sm:$0xff]  ;;  %v313_v45 = vld [vmem:[%s1354_s12 + $0xb8] sm:$0xff] }
  0x89   : > { %768 = vmatprep.subr.bf16.mxu0 %v767_v15  ;;  %v775_v38 = vpack.c.bf16 %v327_v27, %v323_v25  ;;  %v331_v40 = vld [vmem:[%s1354_s12 + $0x148] sm:$0xff]  ;;  %v831_v46 = vpack.c.bf16 %v313_v45, %v309_v44  ;;  %v308_v47 = vld [vmem:[%s1354_s12 + $0x90] sm:$0xff]  ;;  %v777_v49 = vpack.c.bf16 %v326_v39, %v322_v35  ;;  %v330_v50 = vld [vmem:[%s1354_s12 + $0x140] sm:$0xff]  ;;  %830 = vmatpush1.bf16.msra.mxu1 %v829_v43 }
  0x8a   : > { %v335_v42 = vld [vmem:[%s1354_s12 + $0x168] sm:$0xff]  ;;  %v312_v48 = vld [vmem:[%s1354_s12 + $0xb0] sm:$0xff]  ;;  %v317_v51 = vld [vmem:[%s1354_s12 + $0xd8] sm:$0xff] }
  0x8b   : > { %v779_v52 = vpack.c.bf16 %v335_v42, %v331_v40  ;;  %v334_v53 = vld [vmem:[%s1354_s12 + $0x160] sm:$0xff]  ;;  %v339_v54 = vld [vmem:[%s1354_s12 + $0x188] sm:$0xff]  ;;  %v833_v55 = vpack.c.bf16 %v312_v48, %v308_v47  ;;  %v321_v56 = vld [vmem:[%s1354_s12 + $0xf8] sm:$0xff]  ;;  %832 = vmatprep.subr.bf16.mxu1 %v831_v46 }
  0x8c   : > { %770 = vmatpush1.bf16.msra.mxu0 %v769_v20  ;;  %v343_v57 = vld [vmem:[%s1354_s12 + $0x1a8] sm:$0xff]  ;;  %v835_v58 = vpack.c.bf16 %v321_v56, %v317_v51  ;;  %v316_v59 = vld [vmem:[%s1354_s12 + $0xd0] sm:$0xff]  ;;  %v325_v61 = vld [vmem:[%s1354_s12 + $0x118] sm:$0xff]  ;;  %v781_v63 = vpack.c.bf16 %v334_v53, %v330_v50 }
  0x8d   : > { %772 = vmatprep.subr.bf16.mxu0 %v771_v23  ;;  %v320_v60 = vld [vmem:[%s1354_s12 + $0xf0] sm:$0xff]  ;;  %v329_v62 = vld [vmem:[%s1354_s12 + $0x138] sm:$0xff]  ;;  %v783_v0 = vpack.c.bf16 %v343_v57, %v339_v54  ;;  %v338_v1 = vld [vmem:[%s1354_s12 + $0x180] sm:$0xff]  ;;  %834 = vmatpush1.bf16.msra.mxu1 %v833_v55 }
  0x8e   : > { %v342_v2 = vld [vmem:[%s1354_s12 + $0x1a0] sm:$0xff]  ;;  %v347_v3 = vld [vmem:[%s1354_s12 + $0x1c8] sm:$0xff]  ;;  %v837_v4 = vpack.c.bf16 %v320_v60, %v316_v59  ;;  %836 = vmatprep.subr.bf16.mxu1 %v835_v58  ;;  %v839_v6 = vpack.c.bf16 %v329_v62, %v325_v61  ;;  %v324_v7 = vld [vmem:[%s1354_s12 + $0x110] sm:$0xff] }
  0x8f   : > { %v351_v5 = vld [vmem:[%s1354_s12 + $0x1e8] sm:$0xff]  ;;  %v328_v8 = vld [vmem:[%s1354_s12 + $0x130] sm:$0xff]  ;;  %v333_v9 = vld [vmem:[%s1354_s12 + $0x158] sm:$0xff]  ;;  %v785_v11 = vpack.c.bf16 %v342_v2, %v338_v1 }
  0x90   : > { %774 = vmatpush1.bf16.msra.mxu0 %v773_v34  ;;  %v337_v10 = vld [vmem:[%s1354_s12 + $0x178] sm:$0xff]  ;;  %v787_v12 = vpack.c.bf16 %v351_v5, %v347_v3  ;;  %v346_v13 = vld [vmem:[%s1354_s12 + $0x1c0] sm:$0xff]  ;;  %v355_v15 = vld [vmem:[%s1354_s12 + $0x208] sm:$0xff]  ;;  %v841_v16 = vpack.c.bf16 %v328_v8, %v324_v7 }
  0x91   : > { %776 = vmatprep.subr.bf16.mxu0 %v775_v38  ;;  %v350_v14 = vld [vmem:[%s1354_s12 + $0x1e0] sm:$0xff]  ;;  %838 = vmatpush1.bf16.msra.mxu1 %v837_v4  ;;  %v359_v17 = vld [vmem:[%s1354_s12 + $0x228] sm:$0xff]  ;;  %v843_v18 = vpack.c.bf16 %v337_v10, %v333_v9  ;;  %v332_v19 = vld [vmem:[%s1354_s12 + $0x150] sm:$0xff] }
  0x92   : > { %840 = vmatprep.subr.bf16.mxu1 %v839_v6  ;;  %v336_v20 = vld [vmem:[%s1354_s12 + $0x170] sm:$0xff]  ;;  %v341_v21 = vld [vmem:[%s1354_s12 + $0x198] sm:$0xff]  ;;  %v789_v23 = vpack.c.bf16 %v350_v14, %v346_v13  ;;  %v791_v24 = vpack.c.bf16 %v359_v17, %v355_v15  ;;  %v354_v25 = vld [vmem:[%s1354_s12 + $0x200] sm:$0xff] }
  0x93   : > { %v345_v22 = vld [vmem:[%s1354_s12 + $0x1b8] sm:$0xff]  ;;  %v358_v26 = vld [vmem:[%s1354_s12 + $0x220] sm:$0xff]  ;;  %v363_v27 = vld [vmem:[%s1354_s12 + $0x248] sm:$0xff]  ;;  %v845_v28 = vpack.c.bf16 %v336_v20, %v332_v19 }
  0x94   : > { %778 = vmatpush1.bf16.msra.mxu0 %v777_v49  ;;  %v367_v29 = vld [vmem:[%s1354_s12 + $0x268] sm:$0xff]  ;;  %v847_v30 = vpack.c.bf16 %v345_v22, %v341_v21  ;;  %v340_v31 = vld [vmem:[%s1354_s12 + $0x190] sm:$0xff]  ;;  %v349_v33 = vld [vmem:[%s1354_s12 + $0x1d8] sm:$0xff]  ;;  %v793_v35 = vpack.c.bf16 %v358_v26, %v354_v25 }
  0x95   : > { %780 = vmatprep.subr.bf16.mxu0 %v779_v52  ;;  %842 = vmatpush1.bf16.msra.mxu1 %v841_v16  ;;  %v344_v32 = vld [vmem:[%s1354_s12 + $0x1b0] sm:$0xff]  ;;  %v353_v34 = vld [vmem:[%s1354_s12 + $0x1f8] sm:$0xff]  ;;  %v362_v36 = vld [vmem:[%s1354_s12 + $0x240] sm:$0xff]  ;;  %v795_v37 = vpack.c.bf16 %v367_v29, %v363_v27 }
  0x96   : > { %844 = vmatprep.subr.bf16.mxu1 %v843_v18  ;;  %v366_v38 = vld [vmem:[%s1354_s12 + $0x260] sm:$0xff]  ;;  %v371_v39 = vld [vmem:[%s1354_s12 + $0x288] sm:$0xff]  ;;  %v849_v41 = vpack.c.bf16 %v344_v32, %v340_v31  ;;  %v851_v42 = vpack.c.bf16 %v353_v34, %v349_v33  ;;  %v348_v43 = vld [vmem:[%s1354_s12 + $0x1d0] sm:$0xff] }
  0x97   : > { %v375_v40 = vld [vmem:[%s1354_s12 + $0x2a8] sm:$0xff]  ;;  %v352_v44 = vld [vmem:[%s1354_s12 + $0x1f0] sm:$0xff]  ;;  %v357_v46 = vld [vmem:[%s1354_s12 + $0x218] sm:$0xff]  ;;  %v797_v48 = vpack.c.bf16 %v366_v38, %v362_v36 }
  0x98   : > { %782 = vmatpush1.bf16.msra.mxu0 %v781_v63  ;;  %v1435_v45 = vld [vmem:[%s1340_s21] sm:$0xff]  ;;  %v799_v49 = vpack.c.bf16 %v375_v40, %v371_v39  ;;  %v370_v50 = vld [vmem:[%s1354_s12 + $0x280] sm:$0xff]  ;;  %v379_v52 = vld [vmem:[%s1354_s12 + $0x2c8] sm:$0xff]  ;;  %v853_v53 = vpack.c.bf16 %v352_v44, %v348_v43 }
  0x99   : > { %784 = vmatprep.subr.bf16.mxu0 %v783_v0  ;;  %846 = vmatpush1.bf16.msra.mxu1 %v845_v28  ;;  %v361_v47 = vld [vmem:[%s1354_s12 + $0x238] sm:$0xff]  ;;  %v374_v51 = vld [vmem:[%s1354_s12 + $0x2a0] sm:$0xff]  ;;  %v383_v54 = vld [vmem:[%s1354_s12 + $0x2e8] sm:$0xff] }
  0x9a   : > { %848 = vmatprep.subr.bf16.mxu1 %v847_v30  ;;  %504 = vmatprep.mubr.f32.mxu0 %v1435_v45  ;;  %v855_v55 = vpack.c.bf16 %v361_v47, %v357_v46  ;;  %v356_v56 = vld [vmem:[%s1354_s12 + $0x210] sm:$0xff]  ;;  %v365_v58 = vld [vmem:[%s1354_s12 + $0x258] sm:$0xff]  ;;  %v801_v60 = vpack.c.bf16 %v374_v51, %v370_v50  ;;  %v803_v61 = vpack.c.bf16 %v383_v54, %v379_v52  ;;  %v378_v62 = vld [vmem:[%s1354_s12 + $0x2c0] sm:$0xff] }
  0x9b   : > { %575 = vmatprep.mubr.f32.mxu1 %v1435_v45  ;;  %v360_v57 = vld [vmem:[%s1354_s12 + $0x230] sm:$0xff]  ;;  %v369_v59 = vld [vmem:[%s1354_s12 + $0x278] sm:$0xff]  ;;  %v382_v63 = vld [vmem:[%s1354_s12 + $0x2e0] sm:$0xff] }
  0x9c   : > { %786 = vmatpush1.bf16.msra.mxu0 %v785_v11  ;;  %v387_v0 = vld [vmem:[%s1354_s12 + $0x308] sm:$0xff]  ;;  %v857_v1 = vpack.c.bf16 %v360_v57, %v356_v56  ;;  %v859_v3 = vpack.c.bf16 %v369_v59, %v365_v58  ;;  %v364_v4 = vld [vmem:[%s1354_s12 + $0x250] sm:$0xff]  ;;  %v373_v6 = vld [vmem:[%s1354_s12 + $0x298] sm:$0xff]  ;;  %v805_v8 = vpack.c.bf16 %v382_v63, %v378_v62 }
  0x9d   : > { %788 = vmatprep.subr.bf16.mxu0 %v787_v12  ;;  %850 = vmatpush1.bf16.msra.mxu1 %v849_v41  ;;  %v391_v2 = vld [vmem:[%s1354_s12 + $0x328] sm:$0xff]  ;;  %v368_v5 = vld [vmem:[%s1354_s12 + $0x270] sm:$0xff]  ;;  %v377_v7 = vld [vmem:[%s1354_s12 + $0x2b8] sm:$0xff] }
  0x9e   : > { %852 = vmatprep.subr.bf16.mxu1 %v851_v42  ;;  %v807_v9 = vpack.c.bf16 %v391_v2, %v387_v0  ;;  %v386_v10 = vld [vmem:[%s1354_s12 + $0x300] sm:$0xff]  ;;  %v395_v12 = vld [vmem:[%s1354_s12 + $0x348] sm:$0xff]  ;;  %v861_v13 = vpack.c.bf16 %v368_v5, %v364_v4  ;;  %v863_v15 = vpack.c.bf16 %v377_v7, %v373_v6  ;;  %v372_v16 = vld [vmem:[%s1354_s12 + $0x290] sm:$0xff]  ;;  %v420_v4 = vlaneseq }
  0x9f   : > { %v390_v11 = vld [vmem:[%s1354_s12 + $0x320] sm:$0xff]  ;;  %v399_v14 = vld [vmem:[%s1354_s12 + $0x368] sm:$0xff]  ;;  %v376_v17 = vld [vmem:[%s1354_s12 + $0x2b0] sm:$0xff] }
  0xa0   : > { %790 = vmatpush1.bf16.msra.mxu0 %v789_v23  ;;  %v381_v18 = vld [vmem:[%s1354_s12 + $0x2d8] sm:$0xff]  ;;  %v809_v20 = vpack.c.bf16 %v390_v11, %v386_v10  ;;  %v811_v21 = vpack.c.bf16 %v399_v14, %v395_v12  ;;  %v394_v22 = vld [vmem:[%s1354_s12 + $0x340] sm:$0xff]  ;;  %v865_v25 = vpack.c.bf16 %v376_v17, %v372_v16  ;;  %v407_v26 = vld [vmem:[%s1354_s12 + $0x3a8] sm:$0xff]  ;;  %v421_v5 = vshrl.u32 %v420_v4, 7 }
  0xa1   : > { %792 = vmatprep.subr.bf16.mxu0 %v791_v24  ;;  %854 = vmatpush1.bf16.msra.mxu1 %v853_v53  ;;  %v385_v19 = vld [vmem:[%s1354_s12 + $0x2f8] sm:$0xff]  ;;  %v398_v23 = vld [vmem:[%s1354_s12 + $0x360] sm:$0xff]  ;;  %v403_v24 = vld [vmem:[%s1354_s12 + $0x388] sm:$0xff] }
  0xa2   : > { %856 = vmatprep.subr.bf16.mxu1 %v855_v55  ;;  %v867_v27 = vpack.c.bf16 %v385_v19, %v381_v18  ;;  %v380_v28 = vld [vmem:[%s1354_s12 + $0x2d0] sm:$0xff]  ;;  %v389_v30 = vld [vmem:[%s1354_s12 + $0x318] sm:$0xff]  ;;  %v813_v32 = vpack.c.bf16 %v398_v23, %v394_v22  ;;  %v815_v33 = vpack.c.bf16 %v407_v26, %v403_v24  ;;  %v402_v34 = vld [vmem:[%s1354_s12 + $0x380] sm:$0xff]  ;;  %v422_v6 = vsub.s32 0, %v421_v5 }
  0xa3   : > { %v384_v29 = vld [vmem:[%s1354_s12 + $0x2f0] sm:$0xff]  ;;  %v393_v31 = vld [vmem:[%s1354_s12 + $0x338] sm:$0xff]  ;;  %v411_v36 = vld [vmem:[%s1354_s12 + $0x3c8] sm:$0xff]  ;;  %v426_v11 = vsub.s32 1, %v421_v5  ;;  %v430_v22 = vsub.s32 2, %v421_v5 }
  0xa4   : > { %794 = vmatpush1.bf16.msra.mxu0 %v793_v35  ;;  %v406_v35 = vld [vmem:[%s1354_s12 + $0x3a0] sm:$0xff]  ;;  %v415_v38 = vld [vmem:[%s1354_s12 + $0x3e8] sm:$0xff]  ;;  %v871_v39 = vpack.c.bf16 %v393_v31, %v389_v30  ;;  %v388_v40 = vld [vmem:[%s1354_s12 + $0x310] sm:$0xff] }
  0xa5   : > { %796 = vmatprep.subr.bf16.mxu0 %v795_v37  ;;  %858 = vmatpush1.bf16.msra.mxu1 %v857_v1  ;;  %v869_v37 = vpack.c.bf16 %v384_v29, %v380_v28  ;;  %v392_v41 = vld [vmem:[%s1354_s12 + $0x330] sm:$0xff]  ;;  %v397_v42 = vld [vmem:[%s1354_s12 + $0x358] sm:$0xff]  ;;  %v817_v44 = vpack.c.bf16 %v406_v35, %v402_v34  ;;  %v819_v46 = vpack.c.bf16 %v415_v38, %v411_v36  ;;  %v410_v47 = vld [vmem:[%s1354_s12 + $0x3c0] sm:$0xff] }
  0xa6   : > { %860 = vmatprep.subr.bf16.mxu1 %v859_v3  ;;  %v401_v43 = vld [vmem:[%s1354_s12 + $0x378] sm:$0xff]  ;;  %v396_v51 = vld [vmem:[%s1354_s12 + $0x350] sm:$0xff] }
  0xa7   : > { %v875_v50 = vpack.c.bf16 %v401_v43, %v397_v42  ;;  %v400_v52 = vld [vmem:[%s1354_s12 + $0x370] sm:$0xff]  ;;  %v405_v53 = vld [vmem:[%s1354_s12 + $0x398] sm:$0xff] }
  0xa8   : > { %798 = vmatpush1.bf16.msra.mxu0 %v797_v48  ;;  %v414_v48 = vld [vmem:[%s1354_s12 + $0x3e0] sm:$0xff]  ;;  %v409_v54 = vld [vmem:[%s1354_s12 + $0x3b8] sm:$0xff]  ;;  %v877_v56 = vpack.c.bf16 %v400_v52, %v396_v51  ;;  %v404_v58 = vld [vmem:[%s1354_s12 + $0x390] sm:$0xff] }
  0xa9   : > { %800 = vmatprep.subr.bf16.mxu0 %v799_v49  ;;  %862 = vmatpush1.bf16.msra.mxu1 %v861_v13  ;;  %v873_v49 = vpack.c.bf16 %v392_v41, %v388_v40  ;;  %v821_v55 = vpack.c.bf16 %v414_v48, %v410_v47  ;;  %v879_v57 = vpack.c.bf16 %v409_v54, %v405_v53  ;;  %v408_v59 = vld [vmem:[%s1354_s12 + $0x3b0] sm:$0xff]  ;;  %v288_v62 = vld [vmem:[#allocation2] sm:$0xff] }
  0xaa   : > { %864 = vmatprep.subr.bf16.mxu1 %v863_v15  ;;  %v881_v63 = vpack.c.bf16 %v408_v59, %v404_v58  ;;  %v412_v1 = vld [vmem:[%s1354_s12 + $0x3d0] sm:$0xff]  ;;  %v418_v7 = vld [vmem:[%s1352_s7] sm:$0xf] }
  0xab   : > { %v416_v2 = vld [vmem:[%s1354_s12 + $0x3f0] sm:$0xff]  ;;  %v427_v14 = vrot.slane %v418_v7, %v426_v11  ;;  %v431_v24 = vrot.slane %v418_v7, %v430_v22 }
  0xac   : > { %802 = vmatpush1.bf16.msra.mxu0 %v801_v60  ;;  %v413_v60 = vld [vmem:[%s1354_s12 + $0x3d8] sm:$0xff]  ;;  %v885_v3 = vpack.c.bf16 %v416_v2, %v412_v1 }
  0xad   : > { %804 = vmatprep.subr.bf16.mxu0 %v803_v61  ;;  %866 = vmatpush1.bf16.msra.mxu1 %v865_v25  ;;  %v417_v61 = vld [vmem:[%s1354_s12 + $0x3f8] sm:$0xff] }
  0xae   : > { %868 = vmatprep.subr.bf16.mxu1 %v867_v27  ;;  %v883_v0 = vpack.c.bf16 %v417_v61, %v413_v60 }
  0xb0   : > { %806 = vmatpush1.bf16.msra.mxu0 %v805_v8  ;;  %v423_v8 = vrot.slane %v418_v7, %v422_v6 }
  0xb1   : > { %808 = vmatprep.subr.bf16.mxu0 %v807_v9  ;;  %870 = vmatpush1.bf16.msra.mxu1 %v869_v37 }
  0xb2   : > { %872 = vmatprep.subr.bf16.mxu1 %v871_v39 }
  0xb4   : > { %810 = vmatpush1.bf16.msra.mxu0 %v809_v20 }
  0xb5   : > { %812 = vmatprep.subr.bf16.mxu0 %v811_v21  ;;  %874 = vmatpush1.bf16.msra.mxu1 %v873_v49  ;;  %v434_v21 = vsub.s32 3, %v421_v5 }
  0xb6   : > { %876 = vmatprep.subr.bf16.mxu1 %v875_v50 }
  0xb7   : > { %v435_v23 = vrot.slane %v418_v7, %v434_v21 }
  0xb8   : > { %814 = vmatpush1.bf16.msra.mxu0 %v813_v32 }
  0xb9   : > { %816 = vmatprep.subr.bf16.mxu0 %v815_v33  ;;  %878 = vmatpush1.bf16.msra.mxu1 %v877_v56 }
  0xba   : > { %880 = vmatprep.subr.bf16.mxu1 %v879_v57 }
  0xbc   : > { %818 = vmatpush1.bf16.msra.mxu0 %v817_v44 }
  0xbd   : > { %820 = vmatprep.subr.bf16.mxu0 %v819_v46  ;;  %882 = vmatpush1.bf16.msra.mxu1 %v881_v63 }
  0xbe   : > { %884 = vmatprep.subr.bf16.mxu1 %v883_v0 }
  0xc0   : > { %822 = vmatpush1.bf16.msra.mxu0 %v821_v55 }
  0xc1   : > { %886 = vmatpush1.bf16.msra.mxu1 %v885_v3 }
  0xc3   : > { %505 = vmatmul.mubr.f32.vlgmr.msra.gmra.mrb[0].mxu0 %v288_v62 }
  0xc4   : > { %576 = vmatmul.mubr.f32.vlgmr.msra.gmra.mrb[0].mxu1 %v288_v62 }
 0x196   : > { %v506_v9 = vpop.f32.mrb[0].mxu0 }
 0x197   : > { %v507_v10 = vadd.f32 %v506_v9, %v423_v8  ;;  %v508_v12 = vpop.f32.mrb[1].mxu0  ;;  %v577_v16 = vpop.f32.mrb[0].mxu1 }
 0x198   : > { %v509_v15 = vadd.f32 %v508_v12, %v427_v14  ;;  %v579_v17 = vpop.f32.mrb[1].mxu1  ;;  %v578_v28 = vadd.f32 %v577_v16, %v431_v24 }
 0x199   : > { %v751_v13 = vmul.f32 -1.442695, %v507_v10  ;;  %v580_v25 = vadd.f32 %v579_v17, %v435_v23 }
 0x19a   : > { %v752_v18 = vmul.f32 -1.442695, %v509_v15 }
 0x19b   : > { %951 = vpow2.f32 %v751_v13 }
 0x19c   : > { %953 = vpow2.f32 %v752_v18 }
 0x1a5   : > { %v952_v19 = vpop.eup %951 }
 0x1a6   : > { %v585_v20 = vadd.f32 1.0, %v952_v19  ;;  %v954_v26 = vpop.eup %953 }
 0x1a7   : > { %v591_v30 = vadd.f32 1.0, %v954_v26 }
 0x1a8   : > { %955 = vrcp.f32 %v585_v20 }
 0x1b2   : > { %v956_v27 = vpop.eup %955 }
 0x1b3   : > { %v594_v29 = vmul.f32 %v956_v27, %v580_v25 }
 0x1b5   : > { %v595_v31 = vadd.f32 %v594_v29, %v578_v28 }
 0x1b7   : > { %957 = vtanh.f32 %v595_v31 }
 0x1b8   : > { %959 = vrcp.f32 %v591_v30 }
 0x1c1   : > { %v958_v32 = vpop.eup %957 }
 0x1c2   : > { %v597_v33 = vsub.f32 %v1435_v45, %v958_v32  ;;  %v960_v34 = vpop.eup %959  ;;  %605 = sbr.rel (%p753_p5) target bundleno = 457 (0x1c9), region = 56 }
 0x1c4   : > { %v598_v35 = vmul.f32 %v960_v34, %v597_v33 }
 0x1c6   : > { %v599_v36 = vadd.f32 %v958_v32, %v598_v35 }
 0x1c8   : > { %600 = vst [vmem:[%s1356_s10] sm:$0xff] %v599_v36  ;;  %606 = vst [vmem:[#allocation2] sm:$0xff] (!%p753_p5), %v599_v36 }
 0x1c9 PF: > { %s755_s13 = sshll.u32 %s1235_s27, 7  ;;  %s621_s26 = sshll.u32 %s1356_s10, 4  ;;  %s622_s26 = int_to_ptr.vmem [resolvable:$true] %s621_s26 }
 0x1ca   : > { %s1503_s8 = scalar_lea.hbm %s1546_s4, %s755_s13  ;;  %s608_s20 = scalar_lea.sflag [#allocation5], %s1337_s14 }
 0x1cb   : > { %s1049_s23 = scalar_lea.vmem %s622_s26, 128  ;;  %p1564_p0 = scmp.ne.s32.totalorder %s1555_s29, 0 }
 0x1cc   : > { %p1050_p6 = scmp.ne.s32.totalorder %s622_s26, %s1049_s23  ;;  %s1126_s21 = smov [#allocation9]  }
 0x1cd   : > { %s1053_s9 = sshll.u32 %s1126_s21, 4  ;;  %s1054_s9 = int_to_ptr.vmem [resolvable:$false] %s1053_s9 }
 0x1ce   : > { %p1051_p1 = pnand %p1050_p6, %p1564_p0  ;;  %s1055_s11 = scalar_lea.vmem %s1054_s9, 256 }
 0x1cf   : > { %p1056_p12 = scmp.lt.s32.totalorder %s622_s26, %s1054_s9  ;;  %p1057_p11 = scmp.lt.s32.totalorder %s1055_s11, %s1049_s23 }
 0x1d0   : > { %p1052_p2 = pneg %p1051_p1 }
 0x1d1   : > { %p1058_p9 = por %p1057_p11, %p1056_p12 }
 0x1d3   : > { %p1059_p8 = pnand %p1058_p9, %p1052_p2 }
 0x1d5   : > { %1062 = shalt.err (!%p1059_p8)
}
 0x1d6   : > { %s1063_s27 = scalar_lea.hbm %s1503_s8, 128  ;;  %s1067_s25 = scalar_lea.hbm %s1546_s4, 256 }
 0x1d7   : > { %p1064_p4 = scmp.ne.s32.totalorder %s1503_s8, %s1063_s27  ;;  %p1068_p7 = scmp.lt.u32.totalorder %s1503_s8, %s1546_s4 }
 0x1d8   : > { %p1069_p13 = scmp.lt.u32.totalorder %s1067_s25, %s1063_s27  ;;  %p1071_p6 = scmp.lt.u32.totalorder %s1063_s27, %s1503_s8 }
 0x1d9   : > { %p1065_p10 = pnand %p1064_p4, %p1564_p0 }
 0x1da   : > { %p1070_p5 = por %p1069_p13, %p1068_p7 }
 0x1db   : > { %p1066_p3 = pneg %p1065_p10 }
 0x1dc   : > { %p1072_p1 = por %p1071_p6, %p1070_p5 }
 0x1de   : > { %p1073_p2 = pnand %p1072_p1, %p1066_p3 }
 0x1e0   : > { %1076 = shalt.err (!%p1073_p2)
}
 0x1e1   : > { %895 = dma.vmem_to_hbm [thread:$0]  (%p1564_p0), %s622_s26, 128, %s1503_s8, %s608_s20  }
 0x1e2 PF: > { %s633_s12 = sand.u32 1, %s1107_s15   ;;  %p1565_p12 = scmp.ne.s32.totalorder %s1556_s5, 0 }
 0x1e3   : > { %p1566_p11 = scmp.ge.s32.totalorder %s1119_s18, 2  ;;  %s634_s10 = scalar_lea.sflag [#allocation5], %s633_s12 }
 0x1e5   : > { %p909_p9 = pnand %p1566_p11, %p1565_p12 }
 0x1e7   : > { %1102 = dma.done.wait (!%p909_p9), %s634_s10, 128  }
 0x1e8   : > { %1104 = vsyncadd (!%p909_p9), %s634_s10, 4294967168  ;;  %p18_p8 = scmp.ge.s32.totalorder %s1173_s19, 4   ;;  %s1567_s15 = smov %s1111_s16 }
 0x1e9   : > { %s1568_s16 = smov %s1115_s17  ;;  %s1569_s17 = smov %s1184_s22 }
 0x1ea   : > { %s1570_s18 = smov %s1173_s19  ;;  %20 = sbr.rel (!%p18_p8) target bundleno = 8 (0x8), region = 108 }
 0x1f1   :  { %639 = vsyncpa [#allocation4], 1 }
 0x1f2   :  { %641 = vsyncpa [#allocation4 + $0x1], 1 }
 0x1f3   :  { %642 = vsyncpa [#allocation7], 1 }
 0x1f4   :  { %644 = vsyncpa [#allocation7 + $0x1], 1 }
 0x1f5   :  { %645 = vsyncpa [#allocation5], 1 }
 0x1f6   :  { %647 = vsyncpa [#allocation5 + $0x1], 1 }

</bundles_post_ra>
